<compile_context>
chip_gen: v7x
topology: tpu7x:2x2x1
jax: 0.10.0
libtpu: 0.0.40
codegen_flags: <defaults>
</compile_context>

<pallas_src>
import jax
import jax.numpy as jnp
from jax import lax
from jax.experimental import pallas as pl
from jax.experimental.pallas import tpu as pltpu

EPS_REEIG = 1e-4  # default rectification threshold of nn_spd.ReEig


def _spd_pow(S, p):
    """Symmetric matrix power via eigendecomposition (parameter-setup glue)."""
    w, V = jnp.linalg.eigh(S)
    return (V * (w ** p)) @ V.T


def _pick_block(N, max_block=8):
    """Largest divisor of N <= max_block, preferring to keep >= 2 grid steps (v7x: 2 TCs)."""
    divs = [d for d in range(1, N + 1) if N % d == 0 and d <= max_block]
    pref = [d for d in divs if N // d >= 2]
    return max(pref) if pref else max(divs)


def _frspd_kernel(q_ref, w_ref, o_ref):
    """Fused ReEig(sqrt-factorized) -> BiMap -> BatchNormSPD(eval) for B_blk elements.

    q_ref: (B_blk*n_in, C_in*n_in)   rows b*n_in+k, cols ci*n_in+i hold sqrt(d)*U^T
    w_ref: (C_in*n_in, C_out*n_out)  rows ci*n_in+i, cols co*n_out+q hold W[co,ci]@M^T
    o_ref: (B_blk, C_out, n_out, n_out)
    """
    B_blk, C_out, n_out, _ = o_ref.shape
    n_in = q_ref.shape[0] // B_blk
    C_in = w_ref.shape[0] // n_in

    Wf = w_ref[...]  # grid-constant folded weights, (C_in*n_in, C_out*n_out)

    for b in range(B_blk):
        Qb = q_ref[b * n_in:(b + 1) * n_in, :]              # (n_in, C_in*n_in)
        G = jnp.zeros((C_out * n_out, C_out * n_out), jnp.float32)
        for ci in range(C_in):
            # P = Q[b,ci] @ W'[:,ci]  covers all output channels at once.
            P = jnp.dot(Qb[:, ci * n_in:(ci + 1) * n_in],
                        Wf[ci * n_in:(ci + 1) * n_in, :],
                        preferred_element_type=jnp.float32)  # (n_in, C_out*n_out)
            # Gram update: G += P^T P == W'^T X_rect W' summed over c_in.
            G = G + lax.dot_general(P, P, (((0,), (0,)), ((), ())),
                                    preferred_element_type=jnp.float32)
        # Outputs are the diagonal n_out x n_out blocks of G.
        for co in range(C_out):
            o_ref[b, co] = G[co * n_out:(co + 1) * n_out,
                             co * n_out:(co + 1) * n_out].astype(o_ref.dtype)


def factorized_reduce_spdnet(x, W, bn_weight, bn_running_mean, *, max_block=8):
    """x: (N, C_in, n_in, n_in) batch of SPD matrices -> (N, C_out, n_out, n_out)."""
    N, C_in, n_in, _ = x.shape
    C_out, _, _, n_out = W.shape

    # TODO(synk): the symmetric eigendecomposition required by ReEig (and the BN
    # parameter matrix roots) has no clean Pallas primitive and runs in XLA; the
    # training-mode Karcher-mean BatchNormSPD is out of scope (eval-mode path only).
    lam, U = jnp.linalg.eigh(x)                        # (N,C_in,n_in), (N,C_in,n_in,n_in)
    s = jnp.sqrt(jnp.maximum(lam, EPS_REEIG))          # ReEig clamp, then sqrt factor
    # Q = (U diag(s))^T  so that  X_rect = Q^T Q ; lane-merge the channel dim.
    Q = s[..., :, None] * jnp.swapaxes(U, -1, -2)      # (N, C_in, n_in, n_in)
    Qm = jnp.transpose(Q, (0, 2, 1, 3)).reshape(N * n_in, C_in * n_in)

    # Fold eval-mode BatchNormSPD into the BiMap weights:
    #   M (W^T X W) M^T == (W M^T)^T X (W M^T),  M = bn_weight^{1/2} running_mean^{-1/2}
    M = _spd_pow(bn_weight, 0.5) @ _spd_pow(bn_running_mean, -0.5)
    Wp = jnp.einsum('ocip,qp->ociq', W, M)             # W' = W @ M^T
    Wf = jnp.transpose(Wp, (1, 2, 0, 3)).reshape(C_in * n_in, C_out * n_out)

    B_blk = _pick_block(N, max_block)

    # VMEM footprint per step is a few tens of KB (Q block + W' + out, double-
    # buffered), far below the 16/32 MiB default scoped limit on v5e/v6e/v7x.
    return pl.pallas_call(
        _frspd_kernel,
        out_shape=jax.ShapeDtypeStruct((N, C_out, n_out, n_out), jnp.float32),
        grid=(N // B_blk,),
        in_specs=[
            pl.BlockSpec((B_blk * n_in, C_in * n_in), lambda i: (i, 0)),
            pl.BlockSpec((C_in * n_in, C_out * n_out), lambda i: (0, 0)),
        ],
        out_specs=pl.BlockSpec((B_blk, C_out, n_out, n_out), lambda i: (i, 0, 0, 0)),
        compiler_params=pltpu.CompilerParams(dimension_semantics=("parallel",)),
    )(Qm, Wf)


def _reference(x, W, bn_weight, bn_running_mean):
    """Pure-JAX reference of the exact forward semantics."""
    lam, U = jnp.linalg.eigh(x)
    lam = jnp.maximum(lam, EPS_REEIG)
    Xr = jnp.einsum('bcip,bcp,bcjp->bcij', U, lam, U)           # ReEig
    out = jnp.einsum('ocip,bcij,ocjq->bopq', W, Xr, W)          # BiMap (sum over c_in)
    M = _spd_pow(bn_weight, 0.5) @ _spd_pow(bn_running_mean, -0.5)
    return jnp.einsum('pi,boij,qj->bopq', M, out, M)            # BatchNormSPD (eval)


if __name__ == "__main__":
    key = jax.random.PRNGKey(0)
    N, C_in, C_out, n_in, n_out = 8, 4, 4, 16, 8
    k_x, k_w, k_g, k_m = jax.random.split(key, 4)

    # Batch of SPD inputs.
    A = jax.random.normal(k_x, (N, C_in, n_in, n_in), jnp.float32)
    x = jnp.einsum('bcij,bckj->bcik', A, A) / n_in + 1e-2 * jnp.eye(n_in, dtype=jnp.float32)

    # BiMap weights: deterministic semi-orthogonal (Stiefel) matrices,
    # shape (C_out, C_in, dim_in, dim_out), as in nn_spd.BiMap.
    Wr = jax.random.normal(k_w, (C_out, C_in, n_in, n_out), jnp.float32)
    W, _ = jnp.linalg.qr(Wr)

    # BatchNormSPD parameters (module __init__ sets identity; use non-identity SPD
    # values so the folded congruence path is actually exercised).
    Bg = jax.random.normal(k_g, (n_out, n_out), jnp.float32)
    bn_weight = Bg @ Bg.T / n_out + jnp.eye(n_out, dtype=jnp.float32)
    Bm = jax.random.normal(k_m, (n_out, n_out), jnp.float32)
    bn_running_mean = Bm @ Bm.T / n_out + jnp.eye(n_out, dtype=jnp.float32)

    out = jax.block_until_ready(factorized_reduce_spdnet(x, W, bn_weight, bn_running_mean))
    ref = jax.block_until_ready(_reference(x, W, bn_weight, bn_running_mean))

    assert out.shape == (N, C_out, n_out, n_out)
    assert jnp.allclose(out, ref, atol=1e-3, rtol=1e-3), (
        f"max abs err = {jnp.max(jnp.abs(out - ref))}")
    print("KERNEL_OK")
</pallas_src>

<mosaic_0001>
module attributes {stable_mosaic.version = 11 : i64} {
  func.func @_frspd_kernel(%arg0: i32, %arg1: memref<64x64xf32, #tpu.memory_space<vmem>>, %arg2: memref<64x32xf32, #tpu.memory_space<vmem>>, %arg3: memref<4x4x8x8xf32, #tpu.memory_space<vmem>>) attributes {dimension_semantics = [#tpu.dimension_semantics<parallel>], iteration_bounds = array<i64: 2>, scalar_prefetch = 0 : i64, scratch_operands = 0 : i64, tpu.core_type = #tpu.core_type<tc>, window_params = [{transform_indices = @transform_0, window_bounds = array<i64: 64, 64>}, {pipeline_mode = #tpu.pipeline_mode<synchronous>, transform_indices = @transform_1, window_bounds = array<i64: 64, 32>}, {transform_indices = @transform_2, window_bounds = array<i64: 4, 4, 8, 8>}]} {
    %c0 = arith.constant 0 : index
    %c0_0 = arith.constant 0 : index
    %0 = vector.load %arg2[%c0, %c0_0] : memref<64x32xf32, #tpu.memory_space<vmem>>, vector<64x32xf32>
    %c0_1 = arith.constant 0 : index
    %c0_2 = arith.constant 0 : index
    %1 = vector.load %arg1[%c0_1, %c0_2] : memref<64x64xf32, #tpu.memory_space<vmem>>, vector<16x64xf32>
    %cst = arith.constant 0.000000e+00 : f32
    %2 = vector.broadcast %cst : f32 to vector<32x32xf32>
    %3 = vector.extract_strided_slice %1 {offsets = [0, 0], sizes = [16, 16], strides = [1, 1]} : vector<16x64xf32> to vector<16x16xf32>
    %4 = vector.extract_strided_slice %0 {offsets = [0, 0], sizes = [16, 32], strides = [1, 1]} : vector<64x32xf32> to vector<16x32xf32>
    %cst_3 = arith.constant dense<0.000000e+00> : vector<16x32xf32>
    %5 = tpu.matmul %3, %4, %cst_3 {dimension_numbers = #tpu.dot_dimension_numbers<[1], [0], [0], [1], [0, 0, 1, 1], [], []>} : vector<16x16xf32>, vector<16x32xf32>, vector<16x32xf32> -> vector<16x32xf32>
    %cst_4 = arith.constant dense<0.000000e+00> : vector<32x32xf32>
    %6 = tpu.matmul %5, %5, %cst_4 {dimension_numbers = #tpu.dot_dimension_numbers<[0], [0], [1], [1], [0, 1, 1, 1], [], []>} : vector<16x32xf32>, vector<16x32xf32>, vector<32x32xf32> -> vector<32x32xf32>
    %7 = arith.addf %2, %6 : vector<32x32xf32>
    %8 = vector.extract_strided_slice %1 {offsets = [0, 16], sizes = [16, 16], strides = [1, 1]} : vector<16x64xf32> to vector<16x16xf32>
    %9 = vector.extract_strided_slice %0 {offsets = [16, 0], sizes = [16, 32], strides = [1, 1]} : vector<64x32xf32> to vector<16x32xf32>
    %cst_5 = arith.constant dense<0.000000e+00> : vector<16x32xf32>
    %10 = tpu.matmul %8, %9, %cst_5 {dimension_numbers = #tpu.dot_dimension_numbers<[1], [0], [0], [1], [0, 0, 1, 1], [], []>} : vector<16x16xf32>, vector<16x32xf32>, vector<16x32xf32> -> vector<16x32xf32>
    %cst_6 = arith.constant dense<0.000000e+00> : vector<32x32xf32>
    %11 = tpu.matmul %10, %10, %cst_6 {dimension_numbers = #tpu.dot_dimension_numbers<[0], [0], [1], [1], [0, 1, 1, 1], [], []>} : vector<16x32xf32>, vector<16x32xf32>, vector<32x32xf32> -> vector<32x32xf32>
    %12 = arith.addf %7, %11 : vector<32x32xf32>
    %13 = vector.extract_strided_slice %1 {offsets = [0, 32], sizes = [16, 16], strides = [1, 1]} : vector<16x64xf32> to vector<16x16xf32>
    %14 = vector.extract_strided_slice %0 {offsets = [32, 0], sizes = [16, 32], strides = [1, 1]} : vector<64x32xf32> to vector<16x32xf32>
    %cst_7 = arith.constant dense<0.000000e+00> : vector<16x32xf32>
    %15 = tpu.matmul %13, %14, %cst_7 {dimension_numbers = #tpu.dot_dimension_numbers<[1], [0], [0], [1], [0, 0, 1, 1], [], []>} : vector<16x16xf32>, vector<16x32xf32>, vector<16x32xf32> -> vector<16x32xf32>
    %cst_8 = arith.constant dense<0.000000e+00> : vector<32x32xf32>
    %16 = tpu.matmul %15, %15, %cst_8 {dimension_numbers = #tpu.dot_dimension_numbers<[0], [0], [1], [1], [0, 1, 1, 1], [], []>} : vector<16x32xf32>, vector<16x32xf32>, vector<32x32xf32> -> vector<32x32xf32>
    %17 = arith.addf %12, %16 : vector<32x32xf32>
    %18 = vector.extract_strided_slice %1 {offsets = [0, 48], sizes = [16, 16], strides = [1, 1]} : vector<16x64xf32> to vector<16x16xf32>
    %19 = vector.extract_strided_slice %0 {offsets = [48, 0], sizes = [16, 32], strides = [1, 1]} : vector<64x32xf32> to vector<16x32xf32>
    %cst_9 = arith.constant dense<0.000000e+00> : vector<16x32xf32>
    %20 = tpu.matmul %18, %19, %cst_9 {dimension_numbers = #tpu.dot_dimension_numbers<[1], [0], [0], [1], [0, 0, 1, 1], [], []>} : vector<16x16xf32>, vector<16x32xf32>, vector<16x32xf32> -> vector<16x32xf32>
    %cst_10 = arith.constant dense<0.000000e+00> : vector<32x32xf32>
    %21 = tpu.matmul %20, %20, %cst_10 {dimension_numbers = #tpu.dot_dimension_numbers<[0], [0], [1], [1], [0, 1, 1, 1], [], []>} : vector<16x32xf32>, vector<16x32xf32>, vector<32x32xf32> -> vector<32x32xf32>
    %22 = arith.addf %17, %21 : vector<32x32xf32>
    %23 = vector.extract_strided_slice %22 {offsets = [0, 0], sizes = [8, 8], strides = [1, 1]} : vector<32x32xf32> to vector<8x8xf32>
    %c0_11 = arith.constant 0 : index
    %c0_12 = arith.constant 0 : index
    %c0_13 = arith.constant 0 : index
    %c0_14 = arith.constant 0 : index
    %24 = vector.load %arg3[%c0_11, %c0_12, %c0_13, %c0_14] : memref<4x4x8x8xf32, #tpu.memory_space<vmem>>, vector<1x1x8x8xf32>
    %25 = vector.shape_cast %24 : vector<1x1x8x8xf32> to vector<8x8xf32>
    %26 = vector.shape_cast %23 : vector<8x8xf32> to vector<1x1x8x8xf32>
    tpu.vector_store %arg3[%c0_11, %c0_12, %c0_13, %c0_14], %26 {strides = array<i32>} : memref<4x4x8x8xf32, #tpu.memory_space<vmem>>, vector<1x1x8x8xf32>,
    %27 = vector.extract_strided_slice %22 {offsets = [8, 8], sizes = [8, 8], strides = [1, 1]} : vector<32x32xf32> to vector<8x8xf32>
    %c0_15 = arith.constant 0 : index
    %c1 = arith.constant 1 : index
    %c0_16 = arith.constant 0 : index
    %c0_17 = arith.constant 0 : index
    %28 = vector.load %arg3[%c0_15, %c1, %c0_16, %c0_17] : memref<4x4x8x8xf32, #tpu.memory_space<vmem>>, vector<1x1x8x8xf32>
    %29 = vector.shape_cast %28 : vector<1x1x8x8xf32> to vector<8x8xf32>
    %30 = vector.shape_cast %27 : vector<8x8xf32> to vector<1x1x8x8xf32>
    tpu.vector_store %arg3[%c0_15, %c1, %c0_16, %c0_17], %30 {strides = array<i32>} : memref<4x4x8x8xf32, #tpu.memory_space<vmem>>, vector<1x1x8x8xf32>,
    %31 = vector.extract_strided_slice %22 {offsets = [16, 16], sizes = [8, 8], strides = [1, 1]} : vector<32x32xf32> to vector<8x8xf32>
    %c0_18 = arith.constant 0 : index
    %c2 = arith.constant 2 : index
    %c0_19 = arith.constant 0 : index
    %c0_20 = arith.constant 0 : index
    %32 = vector.load %arg3[%c0_18, %c2, %c0_19, %c0_20] : memref<4x4x8x8xf32, #tpu.memory_space<vmem>>, vector<1x1x8x8xf32>
    %33 = vector.shape_cast %32 : vector<1x1x8x8xf32> to vector<8x8xf32>
    %34 = vector.shape_cast %31 : vector<8x8xf32> to vector<1x1x8x8xf32>
    tpu.vector_store %arg3[%c0_18, %c2, %c0_19, %c0_20], %34 {strides = array<i32>} : memref<4x4x8x8xf32, #tpu.memory_space<vmem>>, vector<1x1x8x8xf32>,
    %35 = vector.extract_strided_slice %22 {offsets = [24, 24], sizes = [8, 8], strides = [1, 1]} : vector<32x32xf32> to vector<8x8xf32>
    %c0_21 = arith.constant 0 : index
    %c3 = arith.constant 3 : index
    %c0_22 = arith.constant 0 : index
    %c0_23 = arith.constant 0 : index
    %36 = vector.load %arg3[%c0_21, %c3, %c0_22, %c0_23] : memref<4x4x8x8xf32, #tpu.memory_space<vmem>>, vector<1x1x8x8xf32>
    %37 = vector.shape_cast %36 : vector<1x1x8x8xf32> to vector<8x8xf32>
    %38 = vector.shape_cast %35 : vector<8x8xf32> to vector<1x1x8x8xf32>
    tpu.vector_store %arg3[%c0_21, %c3, %c0_22, %c0_23], %38 {strides = array<i32>} : memref<4x4x8x8xf32, #tpu.memory_space<vmem>>, vector<1x1x8x8xf32>,
    %c16 = arith.constant 16 : index
    %c0_24 = arith.constant 0 : index
    %39 = vector.load %arg1[%c16, %c0_24] : memref<64x64xf32, #tpu.memory_space<vmem>>, vector<16x64xf32>
    %cst_25 = arith.constant 0.000000e+00 : f32
    %40 = vector.broadcast %cst_25 : f32 to vector<32x32xf32>
    %41 = vector.extract_strided_slice %39 {offsets = [0, 0], sizes = [16, 16], strides = [1, 1]} : vector<16x64xf32> to vector<16x16xf32>
    %42 = vector.extract_strided_slice %0 {offsets = [0, 0], sizes = [16, 32], strides = [1, 1]} : vector<64x32xf32> to vector<16x32xf32>
    %cst_26 = arith.constant dense<0.000000e+00> : vector<16x32xf32>
    %43 = tpu.matmul %41, %42, %cst_26 {dimension_numbers = #tpu.dot_dimension_numbers<[1], [0], [0], [1], [0, 0, 1, 1], [], []>} : vector<16x16xf32>, vector<16x32xf32>, vector<16x32xf32> -> vector<16x32xf32>
    %cst_27 = arith.constant dense<0.000000e+00> : vector<32x32xf32>
    %44 = tpu.matmul %43, %43, %cst_27 {dimension_numbers = #tpu.dot_dimension_numbers<[0], [0], [1], [1], [0, 1, 1, 1], [], []>} : vector<16x32xf32>, vector<16x32xf32>, vector<32x32xf32> -> vector<32x32xf32>
    %45 = arith.addf %40, %44 : vector<32x32xf32>
    %46 = vector.extract_strided_slice %39 {offsets = [0, 16], sizes = [16, 16], strides = [1, 1]} : vector<16x64xf32> to vector<16x16xf32>
    %47 = vector.extract_strided_slice %0 {offsets = [16, 0], sizes = [16, 32], strides = [1, 1]} : vector<64x32xf32> to vector<16x32xf32>
    %cst_28 = arith.constant dense<0.000000e+00> : vector<16x32xf32>
    %48 = tpu.matmul %46, %47, %cst_28 {dimension_numbers = #tpu.dot_dimension_numbers<[1], [0], [0], [1], [0, 0, 1, 1], [], []>} : vector<16x16xf32>, vector<16x32xf32>, vector<16x32xf32> -> vector<16x32xf32>
    %cst_29 = arith.constant dense<0.000000e+00> : vector<32x32xf32>
    %49 = tpu.matmul %48, %48, %cst_29 {dimension_numbers = #tpu.dot_dimension_numbers<[0], [0], [1], [1], [0, 1, 1, 1], [], []>} : vector<16x32xf32>, vector<16x32xf32>, vector<32x32xf32> -> vector<32x32xf32>
    %50 = arith.addf %45, %49 : vector<32x32xf32>
    %51 = vector.extract_strided_slice %39 {offsets = [0, 32], sizes = [16, 16], strides = [1, 1]} : vector<16x64xf32> to vector<16x16xf32>
    %52 = vector.extract_strided_slice %0 {offsets = [32, 0], sizes = [16, 32], strides = [1, 1]} : vector<64x32xf32> to vector<16x32xf32>
    %cst_30 = arith.constant dense<0.000000e+00> : vector<16x32xf32>
    %53 = tpu.matmul %51, %52, %cst_30 {dimension_numbers = #tpu.dot_dimension_numbers<[1], [0], [0], [1], [0, 0, 1, 1], [], []>} : vector<16x16xf32>, vector<16x32xf32>, vector<16x32xf32> -> vector<16x32xf32>
    %cst_31 = arith.constant dense<0.000000e+00> : vector<32x32xf32>
    %54 = tpu.matmul %53, %53, %cst_31 {dimension_numbers = #tpu.dot_dimension_numbers<[0], [0], [1], [1], [0, 1, 1, 1], [], []>} : vector<16x32xf32>, vector<16x32xf32>, vector<32x32xf32> -> vector<32x32xf32>
    %55 = arith.addf %50, %54 : vector<32x32xf32>
    %56 = vector.extract_strided_slice %39 {offsets = [0, 48], sizes = [16, 16], strides = [1, 1]} : vector<16x64xf32> to vector<16x16xf32>
    %57 = vector.extract_strided_slice %0 {offsets = [48, 0], sizes = [16, 32], strides = [1, 1]} : vector<64x32xf32> to vector<16x32xf32>
    %cst_32 = arith.constant dense<0.000000e+00> : vector<16x32xf32>
    %58 = tpu.matmul %56, %57, %cst_32 {dimension_numbers = #tpu.dot_dimension_numbers<[1], [0], [0], [1], [0, 0, 1, 1], [], []>} : vector<16x16xf32>, vector<16x32xf32>, vector<16x32xf32> -> vector<16x32xf32>
    %cst_33 = arith.constant dense<0.000000e+00> : vector<32x32xf32>
    %59 = tpu.matmul %58, %58, %cst_33 {dimension_numbers = #tpu.dot_dimension_numbers<[0], [0], [1], [1], [0, 1, 1, 1], [], []>} : vector<16x32xf32>, vector<16x32xf32>, vector<32x32xf32> -> vector<32x32xf32>
    %60 = arith.addf %55, %59 : vector<32x32xf32>
    %61 = vector.extract_strided_slice %60 {offsets = [0, 0], sizes = [8, 8], strides = [1, 1]} : vector<32x32xf32> to vector<8x8xf32>
    %c1_34 = arith.constant 1 : index
    %c0_35 = arith.constant 0 : index
    %c0_36 = arith.constant 0 : index
    %c0_37 = arith.constant 0 : index
    %62 = vector.load %arg3[%c1_34, %c0_35, %c0_36, %c0_37] : memref<4x4x8x8xf32, #tpu.memory_space<vmem>>, vector<1x1x8x8xf32>
    %63 = vector.shape_cast %62 : vector<1x1x8x8xf32> to vector<8x8xf32>
    %64 = vector.shape_cast %61 : vector<8x8xf32> to vector<1x1x8x8xf32>
    tpu.vector_store %arg3[%c1_34, %c0_35, %c0_36, %c0_37], %64 {strides = array<i32>} : memref<4x4x8x8xf32, #tpu.memory_space<vmem>>, vector<1x1x8x8xf32>,
    %65 = vector.extract_strided_slice %60 {offsets = [8, 8], sizes = [8, 8], strides = [1, 1]} : vector<32x32xf32> to vector<8x8xf32>
    %c1_38 = arith.constant 1 : index
    %c1_39 = arith.constant 1 : index
    %c0_40 = arith.constant 0 : index
    %c0_41 = arith.constant 0 : index
    %66 = vector.load %arg3[%c1_38, %c1_39, %c0_40, %c0_41] : memref<4x4x8x8xf32, #tpu.memory_space<vmem>>, vector<1x1x8x8xf32>
    %67 = vector.shape_cast %66 : vector<1x1x8x8xf32> to vector<8x8xf32>
    %68 = vector.shape_cast %65 : vector<8x8xf32> to vector<1x1x8x8xf32>
    tpu.vector_store %arg3[%c1_38, %c1_39, %c0_40, %c0_41], %68 {strides = array<i32>} : memref<4x4x8x8xf32, #tpu.memory_space<vmem>>, vector<1x1x8x8xf32>,
    %69 = vector.extract_strided_slice %60 {offsets = [16, 16], sizes = [8, 8], strides = [1, 1]} : vector<32x32xf32> to vector<8x8xf32>
    %c1_42 = arith.constant 1 : index
    %c2_43 = arith.constant 2 : index
    %c0_44 = arith.constant 0 : index
    %c0_45 = arith.constant 0 : index
    %70 = vector.load %arg3[%c1_42, %c2_43, %c0_44, %c0_45] : memref<4x4x8x8xf32, #tpu.memory_space<vmem>>, vector<1x1x8x8xf32>
    %71 = vector.shape_cast %70 : vector<1x1x8x8xf32> to vector<8x8xf32>
    %72 = vector.shape_cast %69 : vector<8x8xf32> to vector<1x1x8x8xf32>
    tpu.vector_store %arg3[%c1_42, %c2_43, %c0_44, %c0_45], %72 {strides = array<i32>} : memref<4x4x8x8xf32, #tpu.memory_space<vmem>>, vector<1x1x8x8xf32>,
    %73 = vector.extract_strided_slice %60 {offsets = [24, 24], sizes = [8, 8], strides = [1, 1]} : vector<32x32xf32> to vector<8x8xf32>
    %c1_46 = arith.constant 1 : index
    %c3_47 = arith.constant 3 : index
    %c0_48 = arith.constant 0 : index
    %c0_49 = arith.constant 0 : index
    %74 = vector.load %arg3[%c1_46, %c3_47, %c0_48, %c0_49] : memref<4x4x8x8xf32, #tpu.memory_space<vmem>>, vector<1x1x8x8xf32>
    %75 = vector.shape_cast %74 : vector<1x1x8x8xf32> to vector<8x8xf32>
    %76 = vector.shape_cast %73 : vector<8x8xf32> to vector<1x1x8x8xf32>
    tpu.vector_store %arg3[%c1_46, %c3_47, %c0_48, %c0_49], %76 {strides = array<i32>} : memref<4x4x8x8xf32, #tpu.memory_space<vmem>>, vector<1x1x8x8xf32>,
    %c32 = arith.constant 32 : index
    %c0_50 = arith.constant 0 : index
    %77 = vector.load %arg1[%c32, %c0_50] : memref<64x64xf32, #tpu.memory_space<vmem>>, vector<16x64xf32>
    %cst_51 = arith.constant 0.000000e+00 : f32
    %78 = vector.broadcast %cst_51 : f32 to vector<32x32xf32>
    %79 = vector.extract_strided_slice %77 {offsets = [0, 0], sizes = [16, 16], strides = [1, 1]} : vector<16x64xf32> to vector<16x16xf32>
    %80 = vector.extract_strided_slice %0 {offsets = [0, 0], sizes = [16, 32], strides = [1, 1]} : vector<64x32xf32> to vector<16x32xf32>
    %cst_52 = arith.constant dense<0.000000e+00> : vector<16x32xf32>
    %81 = tpu.matmul %79, %80, %cst_52 {dimension_numbers = #tpu.dot_dimension_numbers<[1], [0], [0], [1], [0, 0, 1, 1], [], []>} : vector<16x16xf32>, vector<16x32xf32>, vector<16x32xf32> -> vector<16x32xf32>
    %cst_53 = arith.constant dense<0.000000e+00> : vector<32x32xf32>
    %82 = tpu.matmul %81, %81, %cst_53 {dimension_numbers = #tpu.dot_dimension_numbers<[0], [0], [1], [1], [0, 1, 1, 1], [], []>} : vector<16x32xf32>, vector<16x32xf32>, vector<32x32xf32> -> vector<32x32xf32>
    %83 = arith.addf %78, %82 : vector<32x32xf32>
    %84 = vector.extract_strided_slice %77 {offsets = [0, 16], sizes = [16, 16], strides = [1, 1]} : vector<16x64xf32> to vector<16x16xf32>
    %85 = vector.extract_strided_slice %0 {offsets = [16, 0], sizes = [16, 32], strides = [1, 1]} : vector<64x32xf32> to vector<16x32xf32>
    %cst_54 = arith.constant dense<0.000000e+00> : vector<16x32xf32>
    %86 = tpu.matmul %84, %85, %cst_54 {dimension_numbers = #tpu.dot_dimension_numbers<[1], [0], [0], [1], [0, 0, 1, 1], [], []>} : vector<16x16xf32>, vector<16x32xf32>, vector<16x32xf32> -> vector<16x32xf32>
    %cst_55 = arith.constant dense<0.000000e+00> : vector<32x32xf32>
    %87 = tpu.matmul %86, %86, %cst_55 {dimension_numbers = #tpu.dot_dimension_numbers<[0], [0], [1], [1], [0, 1, 1, 1], [], []>} : vector<16x32xf32>, vector<16x32xf32>, vector<32x32xf32> -> vector<32x32xf32>
    %88 = arith.addf %83, %87 : vector<32x32xf32>
    %89 = vector.extract_strided_slice %77 {offsets = [0, 32], sizes = [16, 16], strides = [1, 1]} : vector<16x64xf32> to vector<16x16xf32>
    %90 = vector.extract_strided_slice %0 {offsets = [32, 0], sizes = [16, 32], strides = [1, 1]} : vector<64x32xf32> to vector<16x32xf32>
    %cst_56 = arith.constant dense<0.000000e+00> : vector<16x32xf32>
    %91 = tpu.matmul %89, %90, %cst_56 {dimension_numbers = #tpu.dot_dimension_numbers<[1], [0], [0], [1], [0, 0, 1, 1], [], []>} : vector<16x16xf32>, vector<16x32xf32>, vector<16x32xf32> -> vector<16x32xf32>
    %cst_57 = arith.constant dense<0.000000e+00> : vector<32x32xf32>
    %92 = tpu.matmul %91, %91, %cst_57 {dimension_numbers = #tpu.dot_dimension_numbers<[0], [0], [1], [1], [0, 1, 1, 1], [], []>} : vector<16x32xf32>, vector<16x32xf32>, vector<32x32xf32> -> vector<32x32xf32>
    %93 = arith.addf %88, %92 : vector<32x32xf32>
    %94 = vector.extract_strided_slice %77 {offsets = [0, 48], sizes = [16, 16], strides = [1, 1]} : vector<16x64xf32> to vector<16x16xf32>
    %95 = vector.extract_strided_slice %0 {offsets = [48, 0], sizes = [16, 32], strides = [1, 1]} : vector<64x32xf32> to vector<16x32xf32>
    %cst_58 = arith.constant dense<0.000000e+00> : vector<16x32xf32>
    %96 = tpu.matmul %94, %95, %cst_58 {dimension_numbers = #tpu.dot_dimension_numbers<[1], [0], [0], [1], [0, 0, 1, 1], [], []>} : vector<16x16xf32>, vector<16x32xf32>, vector<16x32xf32> -> vector<16x32xf32>
    %cst_59 = arith.constant dense<0.000000e+00> : vector<32x32xf32>
    %97 = tpu.matmul %96, %96, %cst_59 {dimension_numbers = #tpu.dot_dimension_numbers<[0], [0], [1], [1], [0, 1, 1, 1], [], []>} : vector<16x32xf32>, vector<16x32xf32>, vector<32x32xf32> -> vector<32x32xf32>
    %98 = arith.addf %93, %97 : vector<32x32xf32>
    %99 = vector.extract_strided_slice %98 {offsets = [0, 0], sizes = [8, 8], strides = [1, 1]} : vector<32x32xf32> to vector<8x8xf32>
    %c2_60 = arith.constant 2 : index
    %c0_61 = arith.constant 0 : index
    %c0_62 = arith.constant 0 : index
    %c0_63 = arith.constant 0 : index
    %100 = vector.load %arg3[%c2_60, %c0_61, %c0_62, %c0_63] : memref<4x4x8x8xf32, #tpu.memory_space<vmem>>, vector<1x1x8x8xf32>
    %101 = vector.shape_cast %100 : vector<1x1x8x8xf32> to vector<8x8xf32>
    %102 = vector.shape_cast %99 : vector<8x8xf32> to vector<1x1x8x8xf32>
    tpu.vector_store %arg3[%c2_60, %c0_61, %c0_62, %c0_63], %102 {strides = array<i32>} : memref<4x4x8x8xf32, #tpu.memory_space<vmem>>, vector<1x1x8x8xf32>,
    %103 = vector.extract_strided_slice %98 {offsets = [8, 8], sizes = [8, 8], strides = [1, 1]} : vector<32x32xf32> to vector<8x8xf32>
    %c2_64 = arith.constant 2 : index
    %c1_65 = arith.constant 1 : index
    %c0_66 = arith.constant 0 : index
    %c0_67 = arith.constant 0 : index
    %104 = vector.load %arg3[%c2_64, %c1_65, %c0_66, %c0_67] : memref<4x4x8x8xf32, #tpu.memory_space<vmem>>, vector<1x1x8x8xf32>
    %105 = vector.shape_cast %104 : vector<1x1x8x8xf32> to vector<8x8xf32>
    %106 = vector.shape_cast %103 : vector<8x8xf32> to vector<1x1x8x8xf32>
    tpu.vector_store %arg3[%c2_64, %c1_65, %c0_66, %c0_67], %106 {strides = array<i32>} : memref<4x4x8x8xf32, #tpu.memory_space<vmem>>, vector<1x1x8x8xf32>,
    %107 = vector.extract_strided_slice %98 {offsets = [16, 16], sizes = [8, 8], strides = [1, 1]} : vector<32x32xf32> to vector<8x8xf32>
    %c2_68 = arith.constant 2 : index
    %c2_69 = arith.constant 2 : index
    %c0_70 = arith.constant 0 : index
    %c0_71 = arith.constant 0 : index
    %108 = vector.load %arg3[%c2_68, %c2_69, %c0_70, %c0_71] : memref<4x4x8x8xf32, #tpu.memory_space<vmem>>, vector<1x1x8x8xf32>
    %109 = vector.shape_cast %108 : vector<1x1x8x8xf32> to vector<8x8xf32>
    %110 = vector.shape_cast %107 : vector<8x8xf32> to vector<1x1x8x8xf32>
    tpu.vector_store %arg3[%c2_68, %c2_69, %c0_70, %c0_71], %110 {strides = array<i32>} : memref<4x4x8x8xf32, #tpu.memory_space<vmem>>, vector<1x1x8x8xf32>,
    %111 = vector.extract_strided_slice %98 {offsets = [24, 24], sizes = [8, 8], strides = [1, 1]} : vector<32x32xf32> to vector<8x8xf32>
    %c2_72 = arith.constant 2 : index
    %c3_73 = arith.constant 3 : index
    %c0_74 = arith.constant 0 : index
    %c0_75 = arith.constant 0 : index
    %112 = vector.load %arg3[%c2_72, %c3_73, %c0_74, %c0_75] : memref<4x4x8x8xf32, #tpu.memory_space<vmem>>, vector<1x1x8x8xf32>
    %113 = vector.shape_cast %112 : vector<1x1x8x8xf32> to vector<8x8xf32>
    %114 = vector.shape_cast %111 : vector<8x8xf32> to vector<1x1x8x8xf32>
    tpu.vector_store %arg3[%c2_72, %c3_73, %c0_74, %c0_75], %114 {strides = array<i32>} : memref<4x4x8x8xf32, #tpu.memory_space<vmem>>, vector<1x1x8x8xf32>,
    %c48 = arith.constant 48 : index
    %c0_76 = arith.constant 0 : index
    %115 = vector.load %arg1[%c48, %c0_76] : memref<64x64xf32, #tpu.memory_space<vmem>>, vector<16x64xf32>
    %cst_77 = arith.constant 0.000000e+00 : f32
    %116 = vector.broadcast %cst_77 : f32 to vector<32x32xf32>
    %117 = vector.extract_strided_slice %115 {offsets = [0, 0], sizes = [16, 16], strides = [1, 1]} : vector<16x64xf32> to vector<16x16xf32>
    %118 = vector.extract_strided_slice %0 {offsets = [0, 0], sizes = [16, 32], strides = [1, 1]} : vector<64x32xf32> to vector<16x32xf32>
    %cst_78 = arith.constant dense<0.000000e+00> : vector<16x32xf32>
    %119 = tpu.matmul %117, %118, %cst_78 {dimension_numbers = #tpu.dot_dimension_numbers<[1], [0], [0], [1], [0, 0, 1, 1], [], []>} : vector<16x16xf32>, vector<16x32xf32>, vector<16x32xf32> -> vector<16x32xf32>
    %cst_79 = arith.constant dense<0.000000e+00> : vector<32x32xf32>
    %120 = tpu.matmul %119, %119, %cst_79 {dimension_numbers = #tpu.dot_dimension_numbers<[0], [0], [1], [1], [0, 1, 1, 1], [], []>} : vector<16x32xf32>, vector<16x32xf32>, vector<32x32xf32> -> vector<32x32xf32>
    %121 = arith.addf %116, %120 : vector<32x32xf32>
    %122 = vector.extract_strided_slice %115 {offsets = [0, 16], sizes = [16, 16], strides = [1, 1]} : vector<16x64xf32> to vector<16x16xf32>
    %123 = vector.extract_strided_slice %0 {offsets = [16, 0], sizes = [16, 32], strides = [1, 1]} : vector<64x32xf32> to vector<16x32xf32>
    %cst_80 = arith.constant dense<0.000000e+00> : vector<16x32xf32>
    %124 = tpu.matmul %122, %123, %cst_80 {dimension_numbers = #tpu.dot_dimension_numbers<[1], [0], [0], [1], [0, 0, 1, 1], [], []>} : vector<16x16xf32>, vector<16x32xf32>, vector<16x32xf32> -> vector<16x32xf32>
    %cst_81 = arith.constant dense<0.000000e+00> : vector<32x32xf32>
    %125 = tpu.matmul %124, %124, %cst_81 {dimension_numbers = #tpu.dot_dimension_numbers<[0], [0], [1], [1], [0, 1, 1, 1], [], []>} : vector<16x32xf32>, vector<16x32xf32>, vector<32x32xf32> -> vector<32x32xf32>
    %126 = arith.addf %121, %125 : vector<32x32xf32>
    %127 = vector.extract_strided_slice %115 {offsets = [0, 32], sizes = [16, 16], strides = [1, 1]} : vector<16x64xf32> to vector<16x16xf32>
    %128 = vector.extract_strided_slice %0 {offsets = [32, 0], sizes = [16, 32], strides = [1, 1]} : vector<64x32xf32> to vector<16x32xf32>
    %cst_82 = arith.constant dense<0.000000e+00> : vector<16x32xf32>
    %129 = tpu.matmul %127, %128, %cst_82 {dimension_numbers = #tpu.dot_dimension_numbers<[1], [0], [0], [1], [0, 0, 1, 1], [], []>} : vector<16x16xf32>, vector<16x32xf32>, vector<16x32xf32> -> vector<16x32xf32>
    %cst_83 = arith.constant dense<0.000000e+00> : vector<32x32xf32>
    %130 = tpu.matmul %129, %129, %cst_83 {dimension_numbers = #tpu.dot_dimension_numbers<[0], [0], [1], [1], [0, 1, 1, 1], [], []>} : vector<16x32xf32>, vector<16x32xf32>, vector<32x32xf32> -> vector<32x32xf32>
    %131 = arith.addf %126, %130 : vector<32x32xf32>
    %132 = vector.extract_strided_slice %115 {offsets = [0, 48], sizes = [16, 16], strides = [1, 1]} : vector<16x64xf32> to vector<16x16xf32>
    %133 = vector.extract_strided_slice %0 {offsets = [48, 0], sizes = [16, 32], strides = [1, 1]} : vector<64x32xf32> to vector<16x32xf32>
    %cst_84 = arith.constant dense<0.000000e+00> : vector<16x32xf32>
    %134 = tpu.matmul %132, %133, %cst_84 {dimension_numbers = #tpu.dot_dimension_numbers<[1], [0], [0], [1], [0, 0, 1, 1], [], []>} : vector<16x16xf32>, vector<16x32xf32>, vector<16x32xf32> -> vector<16x32xf32>
    %cst_85 = arith.constant dense<0.000000e+00> : vector<32x32xf32>
    %135 = tpu.matmul %134, %134, %cst_85 {dimension_numbers = #tpu.dot_dimension_numbers<[0], [0], [1], [1], [0, 1, 1, 1], [], []>} : vector<16x32xf32>, vector<16x32xf32>, vector<32x32xf32> -> vector<32x32xf32>
    %136 = arith.addf %131, %135 : vector<32x32xf32>
    %137 = vector.extract_strided_slice %136 {offsets = [0, 0], sizes = [8, 8], strides = [1, 1]} : vector<32x32xf32> to vector<8x8xf32>
    %c3_86 = arith.constant 3 : index
    %c0_87 = arith.constant 0 : index
    %c0_88 = arith.constant 0 : index
    %c0_89 = arith.constant 0 : index
    %138 = vector.load %arg3[%c3_86, %c0_87, %c0_88, %c0_89] : memref<4x4x8x8xf32, #tpu.memory_space<vmem>>, vector<1x1x8x8xf32>
    %139 = vector.shape_cast %138 : vector<1x1x8x8xf32> to vector<8x8xf32>
    %140 = vector.shape_cast %137 : vector<8x8xf32> to vector<1x1x8x8xf32>
    tpu.vector_store %arg3[%c3_86, %c0_87, %c0_88, %c0_89], %140 {strides = array<i32>} : memref<4x4x8x8xf32, #tpu.memory_space<vmem>>, vector<1x1x8x8xf32>,
    %141 = vector.extract_strided_slice %136 {offsets = [8, 8], sizes = [8, 8], strides = [1, 1]} : vector<32x32xf32> to vector<8x8xf32>
    %c3_90 = arith.constant 3 : index
    %c1_91 = arith.constant 1 : index
    %c0_92 = arith.constant 0 : index
    %c0_93 = arith.constant 0 : index
    %142 = vector.load %arg3[%c3_90, %c1_91, %c0_92, %c0_93] : memref<4x4x8x8xf32, #tpu.memory_space<vmem>>, vector<1x1x8x8xf32>
    %143 = vector.shape_cast %142 : vector<1x1x8x8xf32> to vector<8x8xf32>
    %144 = vector.shape_cast %141 : vector<8x8xf32> to vector<1x1x8x8xf32>
    tpu.vector_store %arg3[%c3_90, %c1_91, %c0_92, %c0_93], %144 {strides = array<i32>} : memref<4x4x8x8xf32, #tpu.memory_space<vmem>>, vector<1x1x8x8xf32>,
    %145 = vector.extract_strided_slice %136 {offsets = [16, 16], sizes = [8, 8], strides = [1, 1]} : vector<32x32xf32> to vector<8x8xf32>
    %c3_94 = arith.constant 3 : index
    %c2_95 = arith.constant 2 : index
    %c0_96 = arith.constant 0 : index
    %c0_97 = arith.constant 0 : index
    %146 = vector.load %arg3[%c3_94, %c2_95, %c0_96, %c0_97] : memref<4x4x8x8xf32, #tpu.memory_space<vmem>>, vector<1x1x8x8xf32>
    %147 = vector.shape_cast %146 : vector<1x1x8x8xf32> to vector<8x8xf32>
    %148 = vector.shape_cast %145 : vector<8x8xf32> to vector<1x1x8x8xf32>
    tpu.vector_store %arg3[%c3_94, %c2_95, %c0_96, %c0_97], %148 {strides = array<i32>} : memref<4x4x8x8xf32, #tpu.memory_space<vmem>>, vector<1x1x8x8xf32>,
    %149 = vector.extract_strided_slice %136 {offsets = [24, 24], sizes = [8, 8], strides = [1, 1]} : vector<32x32xf32> to vector<8x8xf32>
    %c3_98 = arith.constant 3 : index
    %c3_99 = arith.constant 3 : index
    %c0_100 = arith.constant 0 : index
    %c0_101 = arith.constant 0 : index
    %150 = vector.load %arg3[%c3_98, %c3_99, %c0_100, %c0_101] : memref<4x4x8x8xf32, #tpu.memory_space<vmem>>, vector<1x1x8x8xf32>
    %151 = vector.shape_cast %150 : vector<1x1x8x8xf32> to vector<8x8xf32>
    %152 = vector.shape_cast %149 : vector<8x8xf32> to vector<1x1x8x8xf32>
    tpu.vector_store %arg3[%c3_98, %c3_99, %c0_100, %c0_101], %152 {strides = array<i32>} : memref<4x4x8x8xf32, #tpu.memory_space<vmem>>, vector<1x1x8x8xf32>,
    return
  }
  func.func @transform_0(%arg0: i32) -> (i32, i32) {
    %c0_i32 = arith.constant 0 : i32
    %c0_i32_0 = arith.constant 0 : i32
    return %arg0, %c0_i32 : i32, i32
  }
  func.func @transform_1(%arg0: i32) -> (i32, i32) {
    %c0_i32 = arith.constant 0 : i32
    %c0_i32_0 = arith.constant 0 : i32
    %c0_i32_1 = arith.constant 0 : i32
    return %c0_i32, %c0_i32_0 : i32, i32
  }
  func.func @transform_2(%arg0: i32) -> (i32, i32, i32, i32) {
    %c0_i32 = arith.constant 0 : i32
    %c0_i32_0 = arith.constant 0 : i32
    %c0_i32_1 = arith.constant 0 : i32
    %c0_i32_2 = arith.constant 0 : i32
    return %arg0, %c0_i32, %c0_i32_0, %c0_i32_1 : i32, i32, i32, i32
  }
}

</mosaic_0001>

<bundles_post_ra>
// kernel: tpu_custom_call.1
= control target key start
LH: loop header
LB: loop body
LE: loop exit
PB: predicated region body
PF: predicated region fallthrough
CT: control target
= control target key end

     0   :  { %7 = vsyncpa [#allocation3], 0  ;;  %s4978_s0 = inlined_call_operand.vmem [shape: f32[128,64], index: 0, kind: input, shape index: {}]   ;;  %s4979_s1 = inlined_call_operand.vmem [shape: f32[64,32], index: 1, kind: input, shape index: {}]   ;;  %s4980_s2 = inlined_call_operand.hbm [shape: f32[8,4,8,8], index: 2, kind: output, shape index: {}]  }
   0x1   :  { %9 = vsyncpa [#allocation3 + $0x1], 0  ;;  %s4603_s9 = smov 0   ;;  %s4605_s10 = smov 0  }
   0x2   :  { %s4607_s11 = smov 0   ;;  %s4609_s12 = smov 0  }
   0x3 LB: > { %s4624_s13 = sadd.s32 4294967295, %s4578_s12   ;;  %s3735_s14 = sadd.s32 4294967294, %s4578_s12   ;;  %s4578_s12 = sphi %s4609_s12, %s4986_s12   ;;  %s4574_s11 = sphi %s4607_s11, %s4985_s11   ;;  %s4570_s10 = sphi %s4605_s10, %s4984_s10   ;;  %s4566_s9 = sphi %s4603_s9, %s4983_s9  }
   0x4   : > { %s4628_s15 = sadd.s32 1, %s4578_s12   ;;  %s69_s16 = sadd.s32 1, %s4574_s11 }
   0x5   : > { %s66_s17 = ssub.s32 %s4578_s12, %s4628_s15  ;;  %p79_p0 = scmp.ne.s32.totalorder %s4574_s11, %s4570_s10 }
   0x6   : > { %p67_p1 = scmp.eq.s32.totalorder %s66_s17, 0  ;;  %p80_p2 = scmp.eq.s32.totalorder %s4624_s13, 1 }
   0x7   : > { %p85_p3 = scmp.ne.s32.totalorder %s4570_s10, %s4566_s9  ;;  %p86_p4 = scmp.eq.s32.totalorder %s3735_s14, 1 }
   0x8   : > { %s4639_s18 = scalar_select %p67_p1, %s4574_s11, %s69_s16  }
   0x9   : > { %p4641_p5 = por %p80_p2, %p79_p0  ;;  %p4645_p6 = por %p86_p4, %p85_p3 }
   0xa   : > { %p3738_p7 = scmp.ge.s32.totalorder %s4578_s12, 1  ;;  %p116_p8 = scmp.lt.s32.totalorder %s4578_s12, 3 }
   0xc   : > { %p117_p9 = pnand %p3738_p7, %p116_p8 }
   0xd   : > { %s3740_s21 = sshll.u32 (!%p117_p9), %s4624_s13, 3  ;;  %v145_v0 = vld [vmem:[%s4979_s1] sm:$0xff] (!%p117_p9)  ;;  %v146_v1 = vld [vmem:[%s4979_s1 + $0x8] sm:$0xff] (!%p117_p9)  ;;  %v147_v2 = vld [vmem:[%s4979_s1 + $0x10] sm:$0xff] (!%p117_p9)  ;;  %vm155_vm0 = vcmask (!%p117_p9), 130048   ;;  %s4580_s24 = smov (!%p117_p9), 112  }
   0xe   : > { %120 = sbr.rel (%p117_p9) target bundleno = 2030 (0x7ee), region = 28  ;;  %p139_p10 = scmp.lt.s32.totalorder (!%p117_p9), %s3740_s21, 15  ;;  %v4661_v3 = vpack.c.bf16 (!%p117_p9), %v146_v1, %v145_v0  ;;  %v148_v4 = vld [vmem:[%s4979_s1 + $0x18] sm:$0xff] (!%p117_p9)  ;;  %v149_v5 = vld [vmem:[%s4979_s1 + $0x20] sm:$0xff] (!%p117_p9)  ;;  %v150_v6 = vld [vmem:[%s4979_s1 + $0x28] sm:$0xff] (!%p117_p9)  ;;  %vm1010_vm1 = vcmask (!%p117_p9), 64512  }
   0xf   : > { %v4672_v7 = vpack.c.bf16 (!%p117_p9), %v148_v4, %v147_v2  ;;  %v4674_v8 = vpack.c.bf16 (!%p117_p9), %v150_v6, %v149_v5  ;;  %v151_v9 = vld [vmem:[%s4979_s1 + $0x30] sm:$0xff] (!%p117_p9)  ;;  %v152_v10 = vld [vmem:[%s4979_s1 + $0x38] sm:$0xff] (!%p117_p9)  ;;  %s4582_s25 = smov (!%p117_p9), 80   ;;  %s135_s26 = sand.u32 (!%p117_p9), 1, %s4570_s10  }
  0x10   : > { %4294 = vmatprep.subr.bf16.mxu0 (!%p117_p9), %v4661_v3  ;;  %v4683_v11 = vpack.c.bf16 (!%p117_p9), %v152_v10, %v151_v9  ;;  %s3739_s27 = sshll.u32 (!%p117_p9), %s135_s26, 7  ;;  %s4583_s29 = smov (!%p117_p9), 104  }
  0x11   : > { %4296 = vmatpush3.bf16.msra.mxu0 (!%p117_p9), %v4661_v3  ;;  %4310 = vmatprep.subr.bf16.mxu1 (!%p117_p9), %v4674_v8  ;;  %s4792_s28 = scalar_lea.vmem (!%p117_p9), [#allocation2], %s3739_s27  ;;  %s4584_s30 = smov (!%p117_p9), 120  }
  0x12   : > { %4298 = vmatprep.subr.bf16.mxu0 (!%p117_p9), %v4672_v7  ;;  %4312 = vmatpush3.bf16.msra.mxu1 (!%p117_p9), %v4674_v8  ;;  %s3860_s3 = sshll.u32 (!%p117_p9), %s4624_s13, 11  ;;  %s3673_s4 = sshll.u32 (!%p117_p9), %s4792_s28, 4  ;;  %s4929_s4 = int_to_ptr.vmem [resolvable:$true] %s3673_s4 }
  0x13   : > { %4318 = vmatprep.subr.bf16.mxu1 (!%p117_p9), %v4683_v11  ;;  %s4927_s7 = scalar_lea.hbm (!%p117_p9), %s4980_s2, %s3860_s3  ;;  %s4937_s13 = scalar_lea.sflag (!%p117_p9), [#allocation3], %s135_s26 }
  0x14   : > { %s4516_s8 = scalar_lea.vmem (!%p117_p9), %s4929_s4, 2048  ;;  %s4585_s14 = smov (!%p117_p9), [#allocation2]  }
  0x15   : > { %s4988_s21 = smov (!%p139_p10, %s3740_s21), 15  ;;  %p4517_p11 = scmp.ne.s32.totalorder %s4929_s4, %s4516_s8 }
  0x16   : > { %s3741_s16 = sshll.u32 %s4988_s21, 3  ;;  %s4581_s21 = smov 96  }
  0x17   : > { %s4692_s23 = scalar_lea.vmem %s4978_s0, %s3741_s16  ;;  %p4518_p12 = pnand %p4517_p11, %p4641_p5 }
  0x18   : > { %v153_v12 = vld [vmem:[%s4692_s23] sm:$0xff]  ;;  %v154_v13 = vld [vmem:[%s4692_s23 + $0x8] sm:$0xff]  ;;  %v1030_v14 = vld [vmem:[%s4692_s23 + $0x10] sm:$0xff]  ;;  %s4520_s16 = sshll.u32 %s4585_s14, 4  ;;  %s4521_s16 = int_to_ptr.vmem [resolvable:$false] %s4520_s16 }
  0x19   : > { %237 = vrot.lane.b32.xlu0 %v153_v12, %s4580_s24  ;;  %578 = vrot.lane.b32.xlu1 %v153_v12, %s4581_s21  ;;  %v1031_v15 = vld [vmem:[%s4692_s23 + $0x18] sm:$0xff]  ;;  %v4733_v42 = vld [vmem:[%s4692_s23 + $0x28] sm:$0xff]  ;;  %p4519_p13 = pneg %p4518_p12  ;;  %s4522_s17 = scalar_lea.vmem %s4521_s16, 4096 }
  0x1a   : > { %4025 = vmatprep.mubr.msk.f32.mxu0 %vm155_vm0, %v153_v12  ;;  %v1906_v46 = vld [vmem:[%s4692_s23 + $0x20] sm:$0xff]  ;;  %p4523_p0 = scmp.lt.s32.totalorder %s4929_s4, %s4521_s16  ;;  %p4524_p1 = scmp.lt.s32.totalorder %s4522_s17, %s4516_s8 }
  0x1b   : > { %4026 = vmatmul.mubr.msk.f32.vlgmr.msra.gmra.mrb[0].mxu0 %vm155_vm0, %v154_v13 }
  0x1c   : > { %4300 = vmatpush3.bf16.msra.mxu0 %v4672_v7  ;;  %p4525_p2 = por %p4524_p1, %p4523_p0 }
  0x1d   : > { %239 = vrot.lane.b32.xlu0 %v154_v13, %s4580_s24  ;;  %580 = vrot.lane.b32.xlu1 %v154_v13, %s4581_s21 }
  0x1e   : > { %p4526_p3 = pnand %p4525_p2, %p4519_p13 }
  0x21   : > { %794 = vrot.lane.b32.xlu0 %v153_v12, %s4582_s25  ;;  %796 = vrot.lane.b32.xlu1 %v154_v13, %s4582_s25 }
  0x25   : > { %1113 = vrot.lane.b32.xlu0 %v1030_v14, %s4580_s24  ;;  %1115 = vrot.lane.b32.xlu1 %v1031_v15, %s4580_s24 }
  0x8b   : > { %v238_v16 = vpop.permute.xlu0 %237  ;;  %v579_v17 = vpop.permute.xlu1 %578 }
  0x8c   : > { %4032 = vmatprep.mubr.msk.f32.mxu0 %vm155_vm0, %v238_v16  ;;  %4059 = vmatprep.mubr.msk.f32.mxu1 %vm155_vm0, %v579_v17 }
  0x8f   : > { %v240_v18 = vpop.permute.xlu0 %239  ;;  %v581_v19 = vpop.permute.xlu1 %580 }
  0x90   : > { %4033 = vmatmul.mubr.msk.f32.vlgmr.msra.gmra.mrb[2].mxu0 %vm155_vm0, %v240_v18  ;;  %4060 = vmatmul.mubr.msk.f32.vlgmr.msra.gmra.mrb[0].mxu1 %vm155_vm0, %v581_v19 }
  0x91   : > { %4320 = vmatpush3.bf16.msra.mxu1 %v4683_v11 }
  0x92   : > { %4326 = vmatprep.subr.bf16.mxu1 %v4661_v3 }
  0x93   : > { %v795_v20 = vpop.permute.xlu0 %794  ;;  %v797_v21 = vpop.permute.xlu1 %796 }
  0x94   : > { %4076 = vmatprep.mubr.msk.f32.mxu1 %vm155_vm0, %v795_v20 }
  0x95   : > { %4077 = vmatmul.mubr.msk.f32.vlgmr.msra.gmra.mrb[2].mxu1 %vm155_vm0, %v797_v21 }
  0x96   : > { %4328 = vmatpush3.bf16.msra.mxu1 %v4661_v3  ;;  %4093 = vmatprep.mubr.msk.f32.mxu1 %vm155_vm0, %v1030_v14 }
  0x97   : > { %4330 = vmatprep.subr.bf16.mxu1 %v4672_v7  ;;  %v1114_v22 = vpop.permute.xlu0 %1113  ;;  %v1116_v23 = vpop.permute.xlu1 %1115 }
  0x99   : > { %4094 = vmatmul.mubr.msk.f32.vlgmr.msra.gmra.mrb[4].mxu1 %vm155_vm0, %v1031_v15 }
  0x9a   : > { %4332 = vmatpush3.bf16.msra.mxu1 %v4672_v7  ;;  %4100 = vmatprep.mubr.msk.f32.mxu1 %vm155_vm0, %v1114_v22 }
  0x9d   : > { %4101 = vmatmul.mubr.msk.f32.vlgmr.msra.gmra.mrb[6].mxu1 %vm155_vm0, %v1116_v23 }
  0xee   : > { %v4027_v24 = vpop.f32.mrb[0].mxu0 }
  0xef   : > { %v228_v25 = vpop.f32.mrb[1].mxu0 }
  0xf0   : > { %v4305_v26 = vpack.c.bf16 %v4027_v24, %v228_v25  ;;  %449 = vxpose.xlu1.b32.start [1/2] (short) (narrow) %v228_v25, 32 }
  0xf4   : > { %450 = vxpose.xlu1.b32.end [2/2] (short) (narrow) %v4027_v24, 32 }
 0x11a   : > { %1456 = vrot.lane.b32.xlu1 %v1031_v15, %s4581_s21 }
 0x11e   : > { %1670 = vrot.lane.b32.xlu1 %v1030_v14, %s4582_s25 }
 0x122   : > { %1672 = vrot.lane.b32.xlu1 %v1031_v15, %s4582_s25 }
 0x163   : > { %v4034_v27 = vpop.f32.mrb[2].mxu0  ;;  %v4061_v28 = vpop.f32.mrb[0].mxu1 }
 0x164   : > { %v311_v29 = vpop.f32.mrb[3].mxu0  ;;  %v652_v30 = vpop.f32.mrb[1].mxu1 }
 0x165   : > { %v4301_v31 = vpack.c.bf16 %v4034_v27, %v311_v29  ;;  %320 = vxpose.xlu0.b32.start [1/2] (short) (narrow) %v311_v29, 32  ;;  %v4313_v32 = vpack.c.bf16 %v4061_v28, %v652_v30 }
 0x167   : > { %4302 = vmatprep.subr.bf16.mxu0 %v4301_v31 }
 0x168   : > { %4304 = vmatpush3.bf16.msra.mxu0 %v4301_v31  ;;  %v4078_v33 = vpop.f32.mrb[2].mxu1  ;;  %v2782_v31 = vld [vmem:[%s4692_s23 + $0x30] sm:$0xff] }
 0x169   : > { %321 = vxpose.xlu0.b32.end [2/2] (short) (narrow) %v4034_v27, 32  ;;  %4306 = vmatprep.subr.bf16.mxu0 %v4305_v26  ;;  %v868_v34 = vpop.f32.mrb[3].mxu1 }
 0x16a   : > { %v4321_v35 = vpack.c.bf16 %v4078_v33, %v868_v34  ;;  %877 = vxpose.xlu1.b32.start [1/2] (short) (narrow) %v868_v34, 32 }
 0x16c   : > { %v4095_v36 = vpop.f32.mrb[4].mxu1 }
 0x16d   : > { %v1104_v37 = vpop.f32.mrb[5].mxu1 }
 0x16e   : > { %878 = vxpose.xlu1.b32.end [2/2] (short) (narrow) %v4078_v33, 32  ;;  %v4729_v38 = vpack.c.bf16 %v4095_v36, %v1104_v37 }
 0x170   : > { %v4102_v39 = vpop.f32.mrb[6].mxu1  ;;  %v465_v44 = vpop.trf.xlu1 }
 0x171   : > { %v1187_v40 = vpop.f32.mrb[7].mxu1 }
 0x172   : > { %v4333_v41 = vpack.c.bf16 %v4102_v39, %v1187_v40 }
 0x174   : > { %4334 = vmatprep.subr.bf16.mxu1 %v4333_v41  ;;  %v466_v48 = vpop.trf.xlu1 }
 0x175   : > { %4336 = vmatpush3.bf16.msra.mxu1 %v4333_v41 }
 0x176   : > { %4338 = vmatprep.subr.bf16.mxu1 %v4729_v38 }
 0x178   : > { %v467_v50 = vpop.trf.xlu1 }
 0x17c   : > { %v468_v51 = vpop.trf.xlu1 }
 0x18c   : > { %v1457_v52 = vpop.permute.xlu1 %1456 }
 0x190   : > { %v1671_v53 = vpop.permute.xlu1 %1670 }
 0x194   : > { %1991 = vrot.lane.b32.xlu1 %v4733_v42, %s4580_s24  ;;  %v1673_v54 = vpop.permute.xlu1 %1672 }
 0x19a   : > { %1454 = vrot.lane.b32.xlu0 %v1030_v14, %s4581_s21 }
 0x1b8   : > { %661 = vxpose.xlu0.b32.start [1/2] (short) (narrow) %v652_v30, 32  ;;  %v2783_v30 = vld [vmem:[%s4692_s23 + $0x38] sm:$0xff] }
 0x1bc   : > { %662 = vxpose.xlu0.b32.end [2/2] (short) (narrow) %v4061_v28, 32 }
 0x1bd   : > { %1325 = vxpose.xlu1.b32.start [1/2] (short) (narrow) %v1104_v37, 32 }
 0x1c1   : > { %1326 = vxpose.xlu1.b32.end [2/2] (short) (narrow) %v4095_v36, 32 }
 0x1e5   : > { %v336_v43 = vpop.trf.xlu0 }
 0x1e6   : > { %4039 = vmatprep.mubr.msk.f32.mxu0 %vm155_vm0, %v336_v43 }
 0x1e7   : > { %2332 = vrot.lane.b32.xlu1 %v4733_v42, %s4581_s21 }
 0x1e9   : > { %v337_v45 = vpop.trf.xlu0 }
 0x1ea   : > { %4040 = vmatmul.mubr.msk.f32.vlgmr.msra.gmra.mrb[4].mxu0 %vm155_vm0, %v337_v45  ;;  %v893_v57 = vpop.trf.xlu1 }
 0x1eb   : > { %4308 = vmatpush3.bf16.msra.mxu0 %v4305_v26  ;;  %2546 = vrot.lane.b32.xlu1 %v1906_v46, %s4582_s25 }
 0x1ec   : > { %4314 = vmatprep.subr.bf16.mxu0 %v4313_v32 }
 0x1ed   : > { %v338_v47 = vpop.trf.xlu0  ;;  %1989 = vrot.lane.b32.xlu0 %v1906_v46, %s4580_s24 }
 0x1ee   : > { %4042 = vmatprep.mubr.msk.f32.mxu0 %vm155_vm0, %v338_v47  ;;  %v894_v59 = vpop.trf.xlu1 }
 0x1ef   : > { %2548 = vrot.lane.b32.xlu1 %v4733_v42, %s4582_s25 }
 0x1f1   : > { %v339_v49 = vpop.trf.xlu0 }
 0x1f2   : > { %4043 = vmatmul.mubr.msk.f32.gmra.mrb[6].mxu0 %vm155_vm0, %v339_v49  ;;  %v895_v62 = vpop.trf.xlu1 }
 0x1f3   : > { %4049 = vmatprep.mubr.msk.f32.mxu0 %vm155_vm0, %v465_v44 }
 0x1f6   : > { %4050 = vmatmul.mubr.msk.f32.vlgmr.msra.gmra.mrb[4].mxu0 %vm155_vm0, %v466_v48  ;;  %v896_v63 = vpop.trf.xlu1 }
 0x1f7   : > { %4316 = vmatpush3.bf16.msra.mxu0 %v4313_v32  ;;  %4052 = vmatprep.mubr.msk.f32.mxu0 %vm155_vm0, %v467_v50 }
 0x1f8   : > { %4322 = vmatprep.subr.bf16.mxu0 %v4321_v35 }
 0x1fa   : > { %4053 = vmatmul.mubr.msk.f32.gmra.mrb[6].mxu0 %vm155_vm0, %v468_v51 }
 0x206   : > { %v1992_v0 = vpop.permute.xlu1 %1991 }
 0x20b   : > { %1196 = vxpose.xlu0.b32.start [1/2] (short) (narrow) %v1187_v40, 32 }
 0x20c   : > { %v1455_v55 = vpop.permute.xlu0 %1454 }
 0x20f   : > { %1197 = vxpose.xlu0.b32.end [2/2] (short) (narrow) %v4102_v39, 32 }
 0x238   : > { %v677_v56 = vpop.trf.xlu0 }
 0x239   : > { %4066 = vmatprep.mubr.msk.f32.mxu0 %vm155_vm0, %v677_v56 }
 0x23c   : > { %v678_v58 = vpop.trf.xlu0 }
 0x23d   : > { %4067 = vmatmul.mubr.msk.f32.vlgmr.msra.gmra.mrb[4].mxu0 %vm155_vm0, %v678_v58  ;;  %v1341_v6 = vpop.trf.xlu1 }
 0x23e   : > { %4324 = vmatpush3.bf16.msra.mxu0 %v4321_v35 }
 0x23f   : > { %4342 = vmatprep.subr.bf16.mxu0 %v4674_v8 }
 0x240   : > { %v679_v60 = vpop.trf.xlu0  ;;  %2330 = vrot.lane.b32.xlu0 %v1906_v46, %s4581_s21 }
 0x241   : > { %4069 = vmatprep.mubr.msk.f32.mxu0 %vm155_vm0, %v679_v60  ;;  %v1342_v10 = vpop.trf.xlu1 }
 0x244   : > { %v680_v61 = vpop.trf.xlu0 }
 0x245   : > { %4070 = vmatmul.mubr.msk.f32.gmra.mrb[6].mxu0 %vm155_vm0, %v680_v61  ;;  %v1343_v12 = vpop.trf.xlu1 }
 0x246   : > { %4083 = vmatprep.mubr.msk.f32.mxu0 %vm155_vm0, %v893_v57 }
 0x249   : > { %4084 = vmatmul.mubr.msk.f32.vlgmr.msra.gmra.mrb[4].mxu0 %vm155_vm0, %v894_v59  ;;  %v1344_v13 = vpop.trf.xlu1 }
 0x24a   : > { %4344 = vmatpush3.bf16.msra.mxu0 %v4674_v8  ;;  %4086 = vmatprep.mubr.msk.f32.mxu0 %vm155_vm0, %v895_v62 }
 0x24b   : > { %4350 = vmatprep.subr.bf16.mxu0 %v4683_v11 }
 0x24d   : > { %4087 = vmatmul.mubr.msk.f32.gmra.mrb[6].mxu0 %vm155_vm0, %v896_v63 }
 0x24e   : > { %4127 = vmatprep.mubr.msk.f32.mxu0 %vm155_vm0, %v1455_v55 }
 0x251   : > { %4128 = vmatmul.mubr.msk.f32.vlgmr.msra.gmra.mrb[8].mxu0 %vm155_vm0, %v1457_v52 }
 0x252   : > { %4352 = vmatpush3.bf16.msra.mxu0 %v4683_v11  ;;  %4144 = vmatprep.mubr.msk.f32.mxu0 %vm155_vm0, %v1671_v53 }
 0x253   : > { %4358 = vmatprep.subr.bf16.mxu0 %v4661_v3 }
 0x255   : > { %4145 = vmatmul.mubr.msk.f32.vlgmr.msra.gmra.mrb[10].mxu0 %vm155_vm0, %v1673_v54 }
 0x256   : > { %4360 = vmatpush3.bf16.msra.mxu0 %v4661_v3  ;;  %4161 = vmatprep.mubr.msk.f32.mxu0 %vm155_vm0, %v1906_v46 }
 0x257   : > { %4362 = vmatprep.subr.bf16.mxu0 %v4672_v7 }
 0x259   : > { %4162 = vmatmul.mubr.msk.f32.vlgmr.msra.gmra.mrb[12].mxu0 %vm155_vm0, %v4733_v42  ;;  %v2333_v32 = vpop.permute.xlu1 %2332 }
 0x25a   : > { %4364 = vmatpush3.bf16.msra.mxu0 %v4672_v7 }
 0x25d   : > { %v2547_v33 = vpop.permute.xlu1 %2546 }
 0x25f   : > { %v1990_v1 = vpop.permute.xlu0 %1989 }
 0x260   : > { %4168 = vmatprep.mubr.msk.f32.mxu0 %vm155_vm0, %v1990_v1 }
 0x261   : > { %4169 = vmatmul.mubr.msk.f32.vlgmr.msra.gmra.mrb[14].mxu0 %vm155_vm0, %v1992_v0  ;;  %v2549_v35 = vpop.permute.xlu1 %2548 }
 0x28b   : > { %v1212_v2 = vpop.trf.xlu0 }
 0x28c   : > { %4107 = vmatprep.mubr.msk.f32.mxu1 %vm155_vm0, %v1212_v2 }
 0x28f   : > { %v1213_v4 = vpop.trf.xlu0 }
 0x290   : > { %4108 = vmatmul.mubr.msk.f32.vlgmr.msra.gmra.mrb[8].mxu1 %vm155_vm0, %v1213_v4 }
 0x291   : > { %4340 = vmatpush3.bf16.msra.mxu1 %v4729_v38 }
 0x293   : > { %v1214_v5 = vpop.trf.xlu0 }
 0x294   : > { %4110 = vmatprep.mubr.msk.f32.mxu1 %vm155_vm0, %v1214_v5 }
 0x297   : > { %v1215_v9 = vpop.trf.xlu0 }
 0x298   : > { %4111 = vmatmul.mubr.msk.f32.gmra.mrb[10].mxu1 %vm155_vm0, %v1215_v9 }
 0x299   : > { %4117 = vmatprep.mubr.msk.f32.mxu1 %vm155_vm0, %v1341_v6 }
 0x29c   : > { %4118 = vmatmul.mubr.msk.f32.vlgmr.msra.gmra.mrb[8].mxu1 %vm155_vm0, %v1342_v10 }
 0x29d   : > { %4120 = vmatprep.mubr.msk.f32.mxu1 %vm155_vm0, %v1343_v12 }
 0x2a0   : > { %4121 = vmatmul.mubr.msk.f32.gmra.mrb[10].mxu1 %vm155_vm0, %v1344_v13 }
 0x2b2   : > { %v2331_v34 = vpop.permute.xlu0 %2330 }
 0x31c   : > { %v4790_v14 = vpop.f32.mrb[4].mxu0 }
 0x31d   : > { %v987_v15 = vpop.f32.mrb[5].mxu0 }
 0x31e   : > { %1011 = vst.msk [vmem:[%s4792_s28] sm:$0xff] %vm1010_vm1, %v987_v15 }
 0x320   : > { %v4796_v16 = vpop.f32.mrb[6].mxu0 }
 0x321   : > { %v4798_v17 = vpop.f32.mrb[7].mxu0 }
 0x324   : > { %v4129_v18 = vpop.f32.mrb[8].mxu0 }
 0x325   : > { %v1528_v19 = vpop.f32.mrb[9].mxu0 }
 0x326   : > { %v4345_v20 = vpack.c.bf16 %v4129_v18, %v1528_v19  ;;  %1537 = vxpose.xlu0.b32.start [1/2] (short) (narrow) %v1528_v19, 32 }
 0x328   : > { %4346 = vmatprep.subr.bf16.mxu1 %v4345_v20  ;;  %v4146_v21 = vpop.f32.mrb[10].mxu0 }
 0x329   : > { %4348 = vmatpush3.bf16.msra.mxu1 %v4345_v20  ;;  %v1744_v22 = vpop.f32.mrb[11].mxu0 }
 0x32a   : > { %v4353_v23 = vpack.c.bf16 %v4146_v21, %v1744_v22  ;;  %1538 = vxpose.xlu0.b32.end [2/2] (short) (narrow) %v4129_v18, 32  ;;  %1753 = vxpose.xlu1.b32.start [1/2] (short) (narrow) %v1744_v22, 32 }
 0x32c   : > { %4354 = vmatprep.subr.bf16.mxu1 %v4353_v23  ;;  %v4163_v24 = vpop.f32.mrb[12].mxu0 }
 0x32d   : > { %v1980_v25 = vpop.f32.mrb[13].mxu0 }
 0x32e   : > { %1754 = vxpose.xlu1.b32.end [2/2] (short) (narrow) %v4146_v21, 32  ;;  %v4369_v26 = vpack.c.bf16 %v4163_v24, %v1980_v25 }
 0x334   : > { %v4170_v27 = vpop.f32.mrb[14].mxu0 }
 0x335   : > { %v2063_v28 = vpop.f32.mrb[15].mxu0 }
 0x336   : > { %v4365_v29 = vpack.c.bf16 %v4170_v27, %v2063_v28 }
 0x338   : > { %4366 = vmatprep.subr.bf16.mxu0 %v4365_v29 }
 0x339   : > { %4368 = vmatpush3.bf16.msra.mxu0 %v4365_v29 }
 0x33a   : > { %4370 = vmatprep.subr.bf16.mxu0 %v4369_v26 }
 0x354   : > { %2867 = vrot.lane.b32.xlu1 %v2783_v30, %s4580_s24 }
 0x35b   : > { %2865 = vrot.lane.b32.xlu0 %v2782_v31, %s4580_s24 }
 0x379   : > { %2072 = vxpose.xlu0.b32.start [1/2] (short) (narrow) %v2063_v28, 32 }
 0x37d   : > { %2073 = vxpose.xlu0.b32.end [2/2] (short) (narrow) %v4170_v27, 32  ;;  %2201 = vxpose.xlu1.b32.start [1/2] (short) (narrow) %v1980_v25, 32 }
 0x381   : > { %2202 = vxpose.xlu1.b32.end [2/2] (short) (narrow) %v4163_v24, 32 }
 0x3a6   : > { %v1553_v36 = vpop.trf.xlu0 }
 0x3a7   : > { %4134 = vmatprep.mubr.msk.f32.mxu1 %vm155_vm0, %v1553_v36  ;;  %3208 = vrot.lane.b32.xlu1 %v2783_v30, %s4581_s21 }
 0x3aa   : > { %v1554_v37 = vpop.trf.xlu0  ;;  %v1769_v38 = vpop.trf.xlu1 }
 0x3ab   : > { %4135 = vmatmul.mubr.msk.f32.vlgmr.msra.gmra.mrb[8].mxu1 %vm155_vm0, %v1554_v37  ;;  %3422 = vrot.lane.b32.xlu1 %v2782_v31, %s4582_s25 }
 0x3ac   : > { %4356 = vmatpush3.bf16.msra.mxu1 %v4353_v23 }
 0x3ad   : > { %4374 = vmatprep.subr.bf16.mxu1 %v4674_v8 }
 0x3ae   : > { %v1555_v39 = vpop.trf.xlu0  ;;  %v1770_v40 = vpop.trf.xlu1  ;;  %3206 = vrot.lane.b32.xlu0 %v2782_v31, %s4581_s21 }
 0x3af   : > { %4137 = vmatprep.mubr.msk.f32.mxu1 %vm155_vm0, %v1555_v39  ;;  %3424 = vrot.lane.b32.xlu1 %v2783_v30, %s4582_s25 }
 0x3b2   : > { %v1556_v41 = vpop.trf.xlu0  ;;  %v1771_v42 = vpop.trf.xlu1 }
 0x3b3   : > { %4138 = vmatmul.mubr.msk.f32.gmra.mrb[10].mxu1 %vm155_vm0, %v1556_v41 }
 0x3b4   : > { %4151 = vmatprep.mubr.msk.f32.mxu1 %vm155_vm0, %v1769_v38 }
 0x3b6   : > { %v1772_v43 = vpop.trf.xlu1 }
 0x3b7   : > { %4152 = vmatmul.mubr.msk.f32.vlgmr.msra.gmra.mrb[8].mxu1 %vm155_vm0, %v1770_v40 }
 0x3b8   : > { %4376 = vmatpush3.bf16.msra.mxu1 %v4674_v8  ;;  %4154 = vmatprep.mubr.msk.f32.mxu1 %vm155_vm0, %v1771_v42 }
 0x3b9   : > { %4382 = vmatprep.subr.bf16.mxu1 %v4683_v11 }
 0x3bb   : > { %4155 = vmatmul.mubr.msk.f32.gmra.mrb[10].mxu1 %vm155_vm0, %v1772_v43 }
 0x3bc   : > { %4195 = vmatprep.mubr.msk.f32.mxu1 %vm155_vm0, %v2331_v34 }
 0x3bf   : > { %4196 = vmatmul.mubr.msk.f32.vlgmr.msra.gmra.mrb[12].mxu1 %vm155_vm0, %v2333_v32 }
 0x3c0   : > { %4384 = vmatpush3.bf16.msra.mxu1 %v4683_v11  ;;  %4212 = vmatprep.mubr.msk.f32.mxu1 %vm155_vm0, %v2547_v33 }
 0x3c1   : > { %4390 = vmatprep.subr.bf16.mxu1 %v4661_v3 }
 0x3c3   : > { %4213 = vmatmul.mubr.msk.f32.vlgmr.msra.gmra.mrb[14].mxu1 %vm155_vm0, %v2549_v35 }
 0x3c4   : > { %4392 = vmatpush3.bf16.msra.mxu1 %v4661_v3  ;;  %4229 = vmatprep.mubr.msk.f32.mxu1 %vm155_vm0, %v2782_v31 }
 0x3c5   : > { %4394 = vmatprep.subr.bf16.mxu1 %v4672_v7 }
 0x3c6   : > { %v2868_v44 = vpop.permute.xlu1 %2867 }
 0x3c7   : > { %4230 = vmatmul.mubr.msk.f32.vlgmr.msra.gmra.mrb[16].mxu1 %vm155_vm0, %v2783_v30 }
 0x3c8   : > { %4396 = vmatpush3.bf16.msra.mxu1 %v4672_v7 }
 0x3cd   : > { %v2866_v45 = vpop.permute.xlu0 %2865 }
 0x3ce   : > { %4236 = vmatprep.mubr.msk.f32.mxu1 %vm155_vm0, %v2866_v45 }
 0x3cf   : > { %4237 = vmatmul.mubr.msk.f32.vlgmr.msra.gmra.mrb[18].mxu1 %vm155_vm0, %v2868_v44 }
 0x3f9   : > { %v2088_v46 = vpop.trf.xlu0 }
 0x3fa   : > { %4175 = vmatprep.mubr.msk.f32.mxu0 %vm155_vm0, %v2088_v46 }
 0x3fd   : > { %v2089_v47 = vpop.trf.xlu0  ;;  %v2217_v48 = vpop.trf.xlu1 }
 0x3fe   : > { %4176 = vmatmul.mubr.msk.f32.vlgmr.msra.gmra.mrb[16].mxu0 %vm155_vm0, %v2089_v47 }
 0x3ff   : > { %4372 = vmatpush3.bf16.msra.mxu0 %v4369_v26 }
 0x401   : > { %v2090_v3 = vpop.trf.xlu0  ;;  %v2218_v7 = vpop.trf.xlu1 }
 0x402   : > { %4178 = vmatprep.mubr.msk.f32.mxu0 %vm155_vm0, %v2090_v3 }
 0x405   : > { %v2091_v49 = vpop.trf.xlu0  ;;  %v2219_v50 = vpop.trf.xlu1 }
 0x406   : > { %4179 = vmatmul.mubr.msk.f32.gmra.mrb[18].mxu0 %vm155_vm0, %v2091_v49 }
 0x407   : > { %4185 = vmatprep.mubr.msk.f32.mxu0 %vm155_vm0, %v2217_v48 }
 0x409   : > { %v2220_v51 = vpop.trf.xlu1 }
 0x40a   : > { %4186 = vmatmul.mubr.msk.f32.vlgmr.msra.gmra.mrb[16].mxu0 %vm155_vm0, %v2218_v7 }
 0x40b   : > { %4188 = vmatprep.mubr.msk.f32.mxu0 %vm155_vm0, %v2219_v50 }
 0x40e   : > { %4189 = vmatmul.mubr.msk.f32.gmra.mrb[18].mxu0 %vm155_vm0, %v2220_v51 }
 0x419   : > { %v3209_v5 = vpop.permute.xlu1 %3208 }
 0x41d   : > { %v3423_v6 = vpop.permute.xlu1 %3422 }
 0x420   : > { %v3207_v9 = vpop.permute.xlu0 %3206 }
 0x421   : > { %v3425_v10 = vpop.permute.xlu1 %3424 }
 0x48a   : > { %v4840_v52 = vpop.f32.mrb[8].mxu1 }
 0x48b   : > { %v1863_v53 = vpop.f32.mrb[9].mxu1 }
 0x48c   : > { %3793 = vst.msk [vmem:[%s4792_s28 + $0x20] sm:$0xff] %vm1010_vm1, %v1863_v53 }
 0x48e   : > { %v4844_v54 = vpop.f32.mrb[10].mxu1 }
 0x48f   : > { %v4846_v55 = vpop.f32.mrb[11].mxu1 }
 0x492   : > { %v4197_v56 = vpop.f32.mrb[12].mxu1 }
 0x493   : > { %v2404_v57 = vpop.f32.mrb[13].mxu1 }
 0x494   : > { %v4377_v58 = vpack.c.bf16 %v4197_v56, %v2404_v57  ;;  %2413 = vxpose.xlu0.b32.start [1/2] (short) (narrow) %v2404_v57, 32 }
 0x496   : > { %4378 = vmatprep.subr.bf16.mxu0 %v4377_v58  ;;  %v4214_v59 = vpop.f32.mrb[14].mxu1 }
 0x497   : > { %4380 = vmatpush3.bf16.msra.mxu0 %v4377_v58  ;;  %v2620_v60 = vpop.f32.mrb[15].mxu1 }
 0x498   : > { %v4385_v61 = vpack.c.bf16 %v4214_v59, %v2620_v60  ;;  %2414 = vxpose.xlu0.b32.end [2/2] (short) (narrow) %v4197_v56, 32  ;;  %2629 = vxpose.xlu1.b32.start [1/2] (short) (narrow) %v2620_v60, 32 }
 0x49a   : > { %4386 = vmatprep.subr.bf16.mxu0 %v4385_v61  ;;  %v4231_v62 = vpop.f32.mrb[16].mxu1 }
 0x49b   : > { %v2856_v63 = vpop.f32.mrb[17].mxu1 }
 0x49c   : > { %2630 = vxpose.xlu1.b32.end [2/2] (short) (narrow) %v4214_v59, 32  ;;  %v4401_v0 = vpack.c.bf16 %v4231_v62, %v2856_v63 }
 0x4a2   : > { %v4238_v1 = vpop.f32.mrb[18].mxu1 }
 0x4a3   : > { %v2939_v2 = vpop.f32.mrb[19].mxu1 }
 0x4a4   : > { %v4397_v4 = vpack.c.bf16 %v4238_v1, %v2939_v2  ;;  %2948 = vxpose.xlu0.b32.start [1/2] (short) (narrow) %v2939_v2, 32 }
 0x4a6   : > { %4398 = vmatprep.subr.bf16.mxu1 %v4397_v4 }
 0x4a7   : > { %4400 = vmatpush3.bf16.msra.mxu1 %v4397_v4 }
 0x4a8   : > { %2949 = vxpose.xlu0.b32.end [2/2] (short) (narrow) %v4238_v1, 32  ;;  %4402 = vmatprep.subr.bf16.mxu1 %v4401_v0 }
 0x4b1   : > { %3077 = vxpose.xlu0.b32.start [1/2] (short) (narrow) %v2856_v63, 32 }
 0x4b5   : > { %3078 = vxpose.xlu0.b32.end [2/2] (short) (narrow) %v4231_v62, 32 }
 0x514   : > { %v2429_v12 = vpop.trf.xlu0 }
 0x515   : > { %4202 = vmatprep.mubr.msk.f32.mxu0 %vm155_vm0, %v2429_v12 }
 0x518   : > { %v2430_v13 = vpop.trf.xlu0  ;;  %v2645_v15 = vpop.trf.xlu1 }
 0x519   : > { %4203 = vmatmul.mubr.msk.f32.vlgmr.msra.gmra.mrb[16].mxu0 %vm155_vm0, %v2430_v13 }
 0x51a   : > { %4388 = vmatpush3.bf16.msra.mxu0 %v4385_v61 }
 0x51b   : > { %4406 = vmatprep.subr.bf16.mxu0 %v4674_v8 }
 0x51c   : > { %v2431_v18 = vpop.trf.xlu0  ;;  %v2646_v19 = vpop.trf.xlu1 }
 0x51d   : > { %4205 = vmatprep.mubr.msk.f32.mxu0 %vm155_vm0, %v2431_v18 }
 0x520   : > { %v2432_v20 = vpop.trf.xlu0  ;;  %v2647_v21 = vpop.trf.xlu1 }
 0x521   : > { %4206 = vmatmul.mubr.msk.f32.gmra.mrb[18].mxu0 %vm155_vm0, %v2432_v20 }
 0x522   : > { %4219 = vmatprep.mubr.msk.f32.mxu0 %vm155_vm0, %v2645_v15 }
 0x524   : > { %v2648_v22 = vpop.trf.xlu1  ;;  %v2964_v23 = vpop.trf.xlu0 }
 0x525   : > { %4220 = vmatmul.mubr.msk.f32.vlgmr.msra.gmra.mrb[16].mxu0 %vm155_vm0, %v2646_v19  ;;  %4243 = vmatprep.mubr.msk.f32.mxu1 %vm155_vm0, %v2964_v23 }
 0x526   : > { %4408 = vmatpush3.bf16.msra.mxu0 %v4674_v8  ;;  %4222 = vmatprep.mubr.msk.f32.mxu0 %vm155_vm0, %v2647_v21 }
 0x527   : > { %4414 = vmatprep.subr.bf16.mxu0 %v4683_v11 }
 0x528   : > { %v2965_v8 = vpop.trf.xlu0 }
 0x529   : > { %4223 = vmatmul.mubr.msk.f32.gmra.mrb[18].mxu0 %vm155_vm0, %v2648_v22  ;;  %4244 = vmatmul.mubr.msk.f32.vlgmr.msra.gmra.mrb[20].mxu1 %vm155_vm0, %v2965_v8 }
 0x52a   : > { %4263 = vmatprep.mubr.msk.f32.mxu0 %vm155_vm0, %v3207_v9  ;;  %4404 = vmatpush3.bf16.msra.mxu1 %v4401_v0 }
 0x52c   : > { %v2966_v24 = vpop.trf.xlu0 }
 0x52d   : > { %4264 = vmatmul.mubr.msk.f32.vlgmr.msra.gmra.mrb[20].mxu0 %vm155_vm0, %v3209_v5  ;;  %4246 = vmatprep.mubr.msk.f32.mxu1 %vm155_vm0, %v2966_v24 }
 0x52e   : > { %4416 = vmatpush3.bf16.msra.mxu0 %v4683_v11  ;;  %4280 = vmatprep.mubr.msk.f32.mxu0 %vm155_vm0, %v3423_v6 }
 0x530   : > { %v2967_v25 = vpop.trf.xlu0 }
 0x531   : > { %4281 = vmatmul.mubr.msk.f32.vlgmr.msra.gmra.mrb[22].mxu0 %vm155_vm0, %v3425_v10  ;;  %4247 = vmatmul.mubr.msk.f32.gmra.mrb[22].mxu1 %vm155_vm0, %v2967_v25 }
 0x534   : > { %v3093_v26 = vpop.trf.xlu0 }
 0x535   : > { %4253 = vmatprep.mubr.msk.f32.mxu1 %vm155_vm0, %v3093_v26 }
 0x538   : > { %v3094_v11 = vpop.trf.xlu0 }
 0x539   : > { %4254 = vmatmul.mubr.msk.f32.vlgmr.msra.gmra.mrb[20].mxu1 %vm155_vm0, %v3094_v11 }
 0x53c   : > { %v3095_v27 = vpop.trf.xlu0 }
 0x53d   : > { %4256 = vmatprep.mubr.msk.f32.mxu1 %vm155_vm0, %v3095_v27 }
 0x540   : > { %v3096_v28 = vpop.trf.xlu0 }
 0x541   : > { %4257 = vmatmul.mubr.msk.f32.gmra.mrb[22].mxu1 %vm155_vm0, %v3096_v28 }
 0x5f8   : > { %v4221_v29 = vpop.f32.mrb[16].mxu0 }
 0x5f9   : > { %v2739_v30 = vpop.f32.mrb[17].mxu0 }
 0x5fa   : > { %3821 = vst.msk [vmem:[%s4792_s28 + $0x40] sm:$0xff] %vm1010_vm1, %v2739_v30 }
 0x5fc   : > { %v4224_v31 = vpop.f32.mrb[18].mxu0 }
 0x5fd   : > { %v2749_v32 = vpop.f32.mrb[19].mxu0 }
 0x600   : > { %v4265_v33 = vpop.f32.mrb[20].mxu0 }
 0x601   : > { %v3280_v34 = vpop.f32.mrb[21].mxu0 }
 0x602   : > { %v4409_v35 = vpack.c.bf16 %v4265_v33, %v3280_v34  ;;  %3289 = vxpose.xlu0.b32.start [1/2] (short) (narrow) %v3280_v34, 32 }
 0x604   : > { %4410 = vmatprep.subr.bf16.mxu1 %v4409_v35  ;;  %v4282_v36 = vpop.f32.mrb[22].mxu0 }
 0x605   : > { %4412 = vmatpush3.bf16.msra.mxu1 %v4409_v35  ;;  %v3496_v37 = vpop.f32.mrb[23].mxu0 }
 0x606   : > { %v4417_v38 = vpack.c.bf16 %v4282_v36, %v3496_v37  ;;  %3290 = vxpose.xlu0.b32.end [2/2] (short) (narrow) %v4265_v33, 32  ;;  %3505 = vxpose.xlu1.b32.start [1/2] (short) (narrow) %v3496_v37, 32 }
 0x608   : > { %4418 = vmatprep.subr.bf16.mxu1 %v4417_v38 }
 0x60a   : > { %3506 = vxpose.xlu1.b32.end [2/2] (short) (narrow) %v4282_v36, 32 }
 0x630   : > { %1019 = vrot.lane.b32.xlu1 %v4798_v17, %s4580_s24 }
 0x634   : > { %1025 = vrot.lane.b32.xlu1 %v4796_v16, %s4583_s29 }
 0x637   : > { %1013 = vrot.lane.b32.xlu0 %v4790_v14, %s4584_s30 }
 0x638   : > { %1895 = vrot.lane.b32.xlu1 %v4846_v55, %s4580_s24 }
 0x63b   : > { %1889 = vrot.lane.b32.xlu0 %v4840_v52, %s4584_s30 }
 0x63c   : > { %2765 = vrot.lane.b32.xlu1 %v4221_v29, %s4584_s30 }
 0x63f   : > { %1901 = vrot.lane.b32.xlu0 %v4844_v54, %s4583_s29 }
 0x640   : > { %2777 = vrot.lane.b32.xlu1 %v4224_v31, %s4583_s29 }
 0x643   : > { %2771 = vrot.lane.b32.xlu0 %v2749_v32, %s4580_s24 }
 0x682   : > { %v3305_v16 = vpop.trf.xlu0 }
 0x683   : > { %4270 = vmatprep.mubr.msk.f32.mxu1 %vm155_vm0, %v3305_v16 }
 0x686   : > { %v3306_v17 = vpop.trf.xlu0  ;;  %v3521_v14 = vpop.trf.xlu1 }
 0x687   : > { %4271 = vmatmul.mubr.msk.f32.vlgmr.msra.gmra.mrb[20].mxu1 %vm155_vm0, %v3306_v17 }
 0x688   : > { %4420 = vmatpush3.bf16.msra.mxu1 %v4417_v38 }
 0x68a   : > { %v3307_v39 = vpop.trf.xlu0  ;;  %v3522_v40 = vpop.trf.xlu1 }
 0x68b   : > { %4273 = vmatprep.mubr.msk.f32.mxu1 %vm155_vm0, %v3307_v39 }
 0x68e   : > { %v3308_v41 = vpop.trf.xlu0  ;;  %v3523_v42 = vpop.trf.xlu1 }
 0x68f   : > { %4274 = vmatmul.mubr.msk.f32.gmra.mrb[22].mxu1 %vm155_vm0, %v3308_v41 }
 0x690   : > { %4287 = vmatprep.mubr.msk.f32.mxu1 %vm155_vm0, %v3521_v14 }
 0x692   : > { %v3524_v43 = vpop.trf.xlu1 }
 0x693   : > { %4288 = vmatmul.mubr.msk.f32.vlgmr.msra.gmra.mrb[20].mxu1 %vm155_vm0, %v3522_v40 }
 0x694   : > { %4290 = vmatprep.mubr.msk.f32.mxu1 %vm155_vm0, %v3523_v42 }
 0x697   : > { %4291 = vmatmul.mubr.msk.f32.gmra.mrb[22].mxu1 %vm155_vm0, %v3524_v43 }
 0x6a2   : > { %v1020_v44 = vpop.permute.xlu1 %1019 }
 0x6a3   : > { %3767 = vst.msk [vmem:[%s4792_s28 + $0x10] sm:$0xff] %vm1010_vm1, %v1020_v44 }
 0x6a6   : > { %v1026_v45 = vpop.permute.xlu1 %1025 }
 0x6a7   : > { %3768 = vst.msk [vmem:[%s4792_s28 + $0x18] sm:$0xff] %vm1010_vm1, %v1026_v45 }
 0x6a9   : > { %v1014_v46 = vpop.permute.xlu0 %1013 }
 0x6aa   : > { %3766 = vst.msk [vmem:[%s4792_s28 + $0x8] sm:$0xff] %vm1010_vm1, %v1014_v46  ;;  %v1896_v47 = vpop.permute.xlu1 %1895 }
 0x6ab   : > { %3795 = vst.msk [vmem:[%s4792_s28 + $0x30] sm:$0xff] %vm1010_vm1, %v1896_v47 }
 0x6ad   : > { %v1890_v3 = vpop.permute.xlu0 %1889 }
 0x6ae   : > { %3794 = vst.msk [vmem:[%s4792_s28 + $0x28] sm:$0xff] %vm1010_vm1, %v1890_v3  ;;  %v2766_v48 = vpop.permute.xlu1 %2765 }
 0x6af   : > { %3822 = vst.msk [vmem:[%s4792_s28 + $0x48] sm:$0xff] %vm1010_vm1, %v2766_v48 }
 0x6b1   : > { %v1902_v49 = vpop.permute.xlu0 %1901 }
 0x6b2   : > { %3796 = vst.msk [vmem:[%s4792_s28 + $0x38] sm:$0xff] %vm1010_vm1, %v1902_v49  ;;  %v2778_v7 = vpop.permute.xlu1 %2777 }
 0x6b3   : > { %3824 = vst.msk [vmem:[%s4792_s28 + $0x58] sm:$0xff] %vm1010_vm1, %v2778_v7 }
 0x6b5   : > { %v2772_v50 = vpop.permute.xlu0 %2771 }
 0x6b6   : > { %3823 = vst.msk [vmem:[%s4792_s28 + $0x50] sm:$0xff] %vm1010_vm1, %v2772_v50 }
 0x766   : > { %v4289_v51 = vpop.f32.mrb[20].mxu1 }
 0x767   : > { %3641 = vrot.lane.b32.xlu0 %v4289_v51, %s4584_s30  ;;  %v3615_v52 = vpop.f32.mrb[21].mxu1 }
 0x768   : > { %3849 = vst.msk [vmem:[%s4792_s28 + $0x60] sm:$0xff] %vm1010_vm1, %v3615_v52 }
 0x76a   : > { %v4292_v53 = vpop.f32.mrb[22].mxu1 }
 0x76b   : > { %3653 = vrot.lane.b32.xlu0 %v4292_v53, %s4583_s29  ;;  %v3625_v54 = vpop.f32.mrb[23].mxu1 }
 0x76c   : > { %3647 = vrot.lane.b32.xlu1 %v3625_v54, %s4580_s24 }
 0x7d9   : > { %v3642_v55 = vpop.permute.xlu0 %3641 }
 0x7da   : > { %3850 = vst.msk [vmem:[%s4792_s28 + $0x68] sm:$0xff] %vm1010_vm1, %v3642_v55 }
 0x7dd   : > { %v3654_v56 = vpop.permute.xlu0 %3653 }
 0x7de   : > { %3852 = vst.msk [vmem:[%s4792_s28 + $0x78] sm:$0xff] %vm1010_vm1, %v3654_v56  ;;  %v3648_v57 = vpop.permute.xlu1 %3647 }
 0x7df   : > { %3851 = vst.msk [vmem:[%s4792_s28 + $0x70] sm:$0xff] %vm1010_vm1, %v3648_v57 }
 0x7e0   : > { %4529 = shalt.err (!%p4526_p3)
}
 0x7e1   : > { %s4530_s22 = scalar_lea.hbm %s4927_s7, 2048  ;;  %s4534_s21 = scalar_lea.hbm %s4980_s2, 4096 }
 0x7e2   : > { %p4531_p4 = scmp.ne.s32.totalorder %s4927_s7, %s4530_s22  ;;  %p4535_p9 = scmp.lt.u32.totalorder %s4927_s7, %s4980_s2 }
 0x7e3   : > { %p4536_p10 = scmp.lt.u32.totalorder %s4534_s21, %s4530_s22  ;;  %p4538_p12 = scmp.lt.u32.totalorder %s4530_s22, %s4927_s7 }
 0x7e4   : > { %p4532_p7 = pnand %p4531_p4, %p4641_p5 }
 0x7e5   : > { %p4537_p11 = por %p4536_p10, %p4535_p9 }
 0x7e6   : > { %p4533_p8 = pneg %p4532_p7 }
 0x7e7   : > { %p4539_p13 = por %p4538_p12, %p4537_p11 }
 0x7e9   : > { %p4540_p0 = pnand %p4539_p13, %p4533_p8 }
 0x7eb   : > { %4543 = shalt.err (!%p4540_p0)
}
 0x7ec   : > { %s4586_s27 = smov 128   ;;  %s4587_s28 = smov 8  }
 0x7ed   : > { %4469 = dma.vmem_to_hbm [thread:$0]  (%p4641_p5), %s4929_s4, 2048, %s4927_s7, %s4937_s13, %s4586_s27, %s4586_s27, %s4587_s28  }
 0x7ee PF: > { %p4475_p1 = scmp.ge.s32.totalorder %s4578_s12, 2  ;;  %s3688_s29 = sand.u32 1, %s4566_s9  }
 0x7ef   : > { %s3689_s30 = scalar_lea.sflag [#allocation3], %s3688_s29 }
 0x7f0   : > { %p4472_p2 = pnand %p4475_p1, %p4645_p6 }
 0x7f2   : > { %4561 = dma.done.wait (!%p4472_p2), %s3689_s30, 2048  }
 0x7f3   : > { %4563 = vsyncadd (!%p4472_p2), %s3689_s30, 4294965248  ;;  %p12_p3 = scmp.ge.s32.totalorder %s4628_s15, 4   ;;  %s4983_s9 = smov %s4570_s10 }
 0x7f4   : > { %s4984_s10 = smov %s4574_s11  ;;  %s4985_s11 = smov %s4639_s18 }
 0x7f5   : > { %s4986_s12 = smov %s4628_s15  ;;  %14 = sbr.rel (!%p12_p3) target bundleno = 3 (0x3), region = 78 }
 0x7fc   :  { %3694 = vsyncpa [#allocation3], 1 }
 0x7fd   :  { %3696 = vsyncpa [#allocation3 + $0x1], 1 }

</bundles_post_ra>
